<compile_context>
chip_gen: v7x
topology: tpu7x:2x2x1
jax: 0.10.0
libtpu: 0.0.40
codegen_flags: <defaults>
</compile_context>

<pallas_src>
import functools

import jax
import jax.numpy as jnp
from jax import lax
from jax.experimental import pallas as pl
from jax.experimental.pallas import tpu as pltpu


_STATIC_UNROLL_MAX = 16  # static Python unroll up to this many patches


# -----------------------------------------------------------------------------
# Kernel: one batch tile (TB rows) per grid step.
#   x_ref:   (TB, seq_len, C)
#   out_ref: (TB, num_patch, C*patch_len)   -- lane-dense rows, one per patch
# -----------------------------------------------------------------------------
def _patch_kernel(x_ref, out_ref, *, s_begin, stride, patch_len, num_patch):
    tb, _, c = x_ref.shape
    row_w = c * patch_len

    if num_patch <= _STATIC_UNROLL_MAX:
        # Small patch count: static unroll, static slices.
        for p in range(num_patch):
            start = s_begin + p * stride
            win = x_ref[:, start:start + patch_len, :]          # (TB, L, C)
            row = jnp.transpose(win, (0, 2, 1)).reshape(tb, row_w)
            out_ref[:, p, :] = row
    else:
        # Large patch count: visible loop so the scheduler keeps one window
        # live and can software-pipeline load / transpose / store.
        aligned = (s_begin % stride == 0)

        def body(p, carry):
            start = s_begin + p * stride
            if aligned:
                start = pl.multiple_of(start, stride)
            win = x_ref[:, pl.ds(start, patch_len), :]           # (TB, L, C)
            row = jnp.transpose(win, (0, 2, 1)).reshape(tb, 1, row_w)
            out_ref[:, pl.ds(p, 1), :] = row
            return carry

        lax.fori_loop(0, num_patch, body, 0)


# -----------------------------------------------------------------------------
# Batch-tile sizing: VMEM-aware, guarantees >= 2 grid steps for pipelining and
# v7x megacore sharding, keeps per-step slabs in the ~0.5-2 MiB sweet spot.
# -----------------------------------------------------------------------------
def _pick_batch_tile(bs, bytes_per_row, *, target_slab=2 << 20,
                     min_slab=512 << 10, min_steps=8):
    tb = max(1, min(bs, target_slab // max(1, bytes_per_row)))
    # Prefer >= min_steps grid steps, but only if slabs stay >= min_slab.
    tb_steps = -(-bs // min_steps)
    if tb_steps < tb and tb_steps * bytes_per_row >= min_slab:
        tb = tb_steps
    # Always give the pipeline (and v7x's 2nd TensorCore) at least 2 steps.
    if bs >= 2 and tb >= bs:
        tb = -(-bs // 2)
    return max(1, tb)


# -----------------------------------------------------------------------------
# Wrapper: single pallas_call over batch tiles; unfold happens inside the
# kernel; output comes back lane-dense and is reshaped (free) to (bs,P,C,L).
# -----------------------------------------------------------------------------
def patch_forward(x, *, patch_len, stride):
    bs, seq_len, n_vars = x.shape
    num_patch = (max(seq_len, patch_len) - patch_len) // stride + 1
    tgt_len = patch_len + stride * (num_patch - 1)
    s_begin = seq_len - tgt_len
    assert s_begin >= 0, "requires seq_len >= patch_len (as in the reference model)"

    row_w = n_vars * patch_len
    dtype_bytes = jnp.dtype(x.dtype).itemsize
    # input row + output row + one transposed window temp, per batch element.
    bytes_per_row = (seq_len * n_vars + num_patch * row_w + row_w) * dtype_bytes

    tb = _pick_batch_tile(bs, bytes_per_row)
    bs_pad = pl.cdiv(bs, tb) * tb
    xp = x if bs_pad == bs else jnp.pad(x, ((0, bs_pad - bs), (0, 0), (0, 0)))
    grid = (bs_pad // tb,)

    in_bytes = bs_pad * seq_len * n_vars * dtype_bytes
    out_bytes = bs_pad * num_patch * row_w * dtype_bytes

    kernel = functools.partial(
        _patch_kernel,
        s_begin=s_begin, stride=stride,
        patch_len=patch_len, num_patch=num_patch,
    )

    out_flat = pl.pallas_call(
        kernel,
        out_shape=jax.ShapeDtypeStruct((bs_pad, num_patch, row_w), x.dtype),
        grid=grid,
        in_specs=[pl.BlockSpec((tb, seq_len, n_vars), lambda b: (b, 0, 0))],
        out_specs=pl.BlockSpec((tb, num_patch, row_w), lambda b: (b, 0, 0)),
        compiler_params=pltpu.CompilerParams(
            dimension_semantics=("parallel",)),   # shard batch tiles across TCs
        cost_estimate=pl.CostEstimate(
            flops=0, transcendentals=0, bytes_accessed=in_bytes + out_bytes),
    )(xp)

    out = out_flat.reshape(bs_pad, num_patch, n_vars, patch_len)  # free reshape
    if bs_pad != bs:
        out = out[:bs]
    return out


# -----------------------------------------------------------------------------
# Pure-JAX reference (mirrors torch slicing + unfold) for correctness checking.
# -----------------------------------------------------------------------------
def _patch_reference(x, *, patch_len, stride):
    bs, seq_len, n_vars = x.shape
    num_patch = (max(seq_len, patch_len) - patch_len) // stride + 1
    tgt_len = patch_len + stride * (num_patch - 1)
    s_begin = seq_len - tgt_len
    xs = x[:, s_begin:, :]
    windows = jnp.stack(
        [xs[:, p * stride:p * stride + patch_len, :] for p in range(num_patch)],
        axis=1,
    )                                                     # (bs, P, L, C)
    return jnp.transpose(windows, (0, 1, 3, 2))           # (bs, P, C, L)


def _check(bs, seq_len, n_vars, patch_len, stride, seed):
    x = jax.random.normal(jax.random.PRNGKey(seed), (bs, seq_len, n_vars),
                          jnp.float32)
    y = patch_forward(x, patch_len=patch_len, stride=stride)
    jax.block_until_ready(y)
    num_patch = (max(seq_len, patch_len) - patch_len) // stride + 1
    assert y.shape == (bs, num_patch, n_vars, patch_len), y.shape
    assert bool(jnp.all(jnp.isfinite(y)))
    y_ref = _patch_reference(x, patch_len=patch_len, stride=stride)
    assert jnp.allclose(y, y_ref), "Pallas output mismatch vs pure-JAX reference"


if __name__ == "__main__":
    # Primary small case (static-unroll path): x [bs, seq_len, n_vars].
    _check(bs=2, seq_len=16, n_vars=4, patch_len=8, stride=4, seed=0)
    # Secondary case: prime batch (padding path) + num_patch > 16 (fori_loop path).
    _check(bs=3, seq_len=96, n_vars=5, patch_len=8, stride=4, seed=0)
    print("KERNEL_OK")
</pallas_src>

<mosaic_0001>
module attributes {stable_mosaic.version = 11 : i64} {
  func.func @_patch_kernel(%arg0: i32, %arg1: memref<1x16x4xf32, #tpu.memory_space<vmem>>, %arg2: memref<1x3x32xf32, #tpu.memory_space<vmem>>) attributes {dimension_semantics = [#tpu.dimension_semantics<parallel>], iteration_bounds = array<i64: 2>, scalar_prefetch = 0 : i64, scratch_operands = 0 : i64, tpu.core_type = #tpu.core_type<tc>, window_params = [{transform_indices = @transform_0, window_bounds = array<i64: 1, 16, 4>}, {transform_indices = @transform_1, window_bounds = array<i64: 1, 3, 32>}]} {
    %c0 = arith.constant 0 : index
    %c0_0 = arith.constant 0 : index
    %c0_1 = arith.constant 0 : index
    %0 = vector.load %arg1[%c0, %c0_0, %c0_1] : memref<1x16x4xf32, #tpu.memory_space<vmem>>, vector<1x8x4xf32>
    %1 = tpu.transpose %0, [0, 2, 1] : vector<1x8x4xf32> -> vector<1x4x8xf32>
    %2 = vector.shape_cast %1 : vector<1x4x8xf32> to vector<1x32xf32>
    %c0_2 = arith.constant 0 : index
    %c0_3 = arith.constant 0 : index
    %c0_4 = arith.constant 0 : index
    %3 = vector.load %arg2[%c0_2, %c0_3, %c0_4] : memref<1x3x32xf32, #tpu.memory_space<vmem>>, vector<1x1x32xf32>
    %4 = vector.shape_cast %3 : vector<1x1x32xf32> to vector<1x32xf32>
    %5 = vector.shape_cast %2 : vector<1x32xf32> to vector<1x1x32xf32>
    tpu.vector_store %arg2[%c0_2, %c0_3, %c0_4], %5 {strides = array<i32>} : memref<1x3x32xf32, #tpu.memory_space<vmem>>, vector<1x1x32xf32>,
    %c0_5 = arith.constant 0 : index
    %c4 = arith.constant 4 : index
    %c0_6 = arith.constant 0 : index
    %6 = vector.load %arg1[%c0_5, %c4, %c0_6] : memref<1x16x4xf32, #tpu.memory_space<vmem>>, vector<1x8x4xf32>
    %7 = tpu.transpose %6, [0, 2, 1] : vector<1x8x4xf32> -> vector<1x4x8xf32>
    %8 = vector.shape_cast %7 : vector<1x4x8xf32> to vector<1x32xf32>
    %c0_7 = arith.constant 0 : index
    %c1 = arith.constant 1 : index
    %c0_8 = arith.constant 0 : index
    %9 = vector.load %arg2[%c0_7, %c1, %c0_8] : memref<1x3x32xf32, #tpu.memory_space<vmem>>, vector<1x1x32xf32>
    %10 = vector.shape_cast %9 : vector<1x1x32xf32> to vector<1x32xf32>
    %11 = vector.shape_cast %8 : vector<1x32xf32> to vector<1x1x32xf32>
    tpu.vector_store %arg2[%c0_7, %c1, %c0_8], %11 {strides = array<i32>} : memref<1x3x32xf32, #tpu.memory_space<vmem>>, vector<1x1x32xf32>,
    %c0_9 = arith.constant 0 : index
    %c8 = arith.constant 8 : index
    %c0_10 = arith.constant 0 : index
    %12 = vector.load %arg1[%c0_9, %c8, %c0_10] : memref<1x16x4xf32, #tpu.memory_space<vmem>>, vector<1x8x4xf32>
    %13 = tpu.transpose %12, [0, 2, 1] : vector<1x8x4xf32> -> vector<1x4x8xf32>
    %14 = vector.shape_cast %13 : vector<1x4x8xf32> to vector<1x32xf32>
    %c0_11 = arith.constant 0 : index
    %c2 = arith.constant 2 : index
    %c0_12 = arith.constant 0 : index
    %15 = vector.load %arg2[%c0_11, %c2, %c0_12] : memref<1x3x32xf32, #tpu.memory_space<vmem>>, vector<1x1x32xf32>
    %16 = vector.shape_cast %15 : vector<1x1x32xf32> to vector<1x32xf32>
    %17 = vector.shape_cast %14 : vector<1x32xf32> to vector<1x1x32xf32>
    tpu.vector_store %arg2[%c0_11, %c2, %c0_12], %17 {strides = array<i32>} : memref<1x3x32xf32, #tpu.memory_space<vmem>>, vector<1x1x32xf32>,
    return
  }
  func.func @transform_0(%arg0: i32) -> (i32, i32, i32) {
    %c0_i32 = arith.constant 0 : i32
    %c0_i32_0 = arith.constant 0 : i32
    %c0_i32_1 = arith.constant 0 : i32
    return %arg0, %c0_i32, %c0_i32_0 : i32, i32, i32
  }
  func.func @transform_1(%arg0: i32) -> (i32, i32, i32) {
    %c0_i32 = arith.constant 0 : i32
    %c0_i32_0 = arith.constant 0 : i32
    %c0_i32_1 = arith.constant 0 : i32
    return %arg0, %c0_i32, %c0_i32_0 : i32, i32, i32
  }
}

</mosaic_0001>

<bundles_post_ra>
// kernel: tpu_custom_call.1
= control target key start
LH: loop header
LB: loop body
LE: loop exit
PB: predicated region body
PF: predicated region fallthrough
CT: control target
= control target key end

     0   :  { %s440_s6 = smov 0   ;;  %s473_s0 = inlined_call_operand.vmem [shape: f32[2,16,4], index: 0, kind: input, shape index: {}]   ;;  %s474_s1 = inlined_call_operand.vmem [shape: f32[2,3,32], index: 1, kind: output, shape index: {}]  }
   0x1 LB: > { %s391_s7 = sadd.s32 4294967295, %s422_s6   ;;  %p395_p0 = scmp.ge.s32.totalorder %s422_s6, 1  ;;  %s422_s6 = sphi %s440_s6, %s11_s6  }
   0x2   : > { %p87_p1 = scmp.lt.s32.totalorder %s422_s6, 3 }
   0x4   : > { %p88_p2 = pnand %p395_p0, %p87_p1 }
   0x5   : > { %p106_p3 = scmp.lt.s32.totalorder (!%p88_p2), %s391_s7, 1  ;;  %v424_v3 = vmov (!%p88_p2), 1983009808   ;;  %v151_v5 = vlaneseq (!%p88_p2)  ;;  %v425_v6 = vmov (!%p88_p2), 1934713408   ;;  %v426_v17 = vmov (!%p88_p2), 0.0  }
   0x6   : > { %91 = sbr.rel (%p88_p2) target bundleno = 285 (0x11d), region = 24  ;;  %v149_v4 = vunpack.c.l.s4 (!%p88_p2), %v424_v3  ;;  %v157_v7 = vunpack.c.l.s4 (!%p88_p2), %v425_v6  ;;  %s427_s12 = smov (!%p88_p2), 8   ;;  %vm184_vm0 = vcmask (!%p88_p2), 64512   ;;  %vm186_vm1 = vcmask (!%p88_p2), 130048  }
   0x7   : > { %v152_v9 = vshrl.u32 (!%p88_p2), %v151_v5, 7  ;;  %s428_s13 = smov (!%p88_p2), 16   ;;  %s429_s14 = smov (!%p88_p2), 24   ;;  %vm188_vm2 = vcmask (!%p88_p2), 195584   ;;  %vm190_vm3 = vcmask (!%p88_p2), 253952  }
   0x8   : > { %v150_v8 = vunpack.c.0.s8 (!%p88_p2), %v149_v4  ;;  %v158_v10 = vunpack.c.0.s8 (!%p88_p2), %v157_v7 }
   0xa   : > { %v153_v11 = vsub.s32 (!%p88_p2), %v150_v8, %v152_v9  ;;  %v161_v12 = vsub.s32 (!%p88_p2), %v158_v10, %v152_v9 }
   0xd   : > { %s476_s7 = smov (!%p106_p3, %s391_s7), 1 }
   0xe   : > { %s401_s8 = sshll.u32 %s476_s7, 4  ;;  %s398_s15 = sshll.u32 %s476_s7, 2 }
   0xf   : > { %s110_s11 = scalar_lea.vmem %s473_s0, %s401_s8  ;;  %s114_s18 = scalar_lea.vmem %s474_s1, %s398_s15 }
  0x10   : > { %v115_v0 = vld [vmem:[%s110_s11] sm:$0xff]  ;;  %v265_v2 = vld [vmem:[%s110_s11 + $0x8] sm:$0xff] }
  0x11   : > { %v192_v1 = vld [vmem:[%s110_s11 + $0x4] sm:$0xff]  ;;  %116 = vxpose.xlu0.b32.start.end [1/1] (short) (narrow) %v115_v0, 8 }
  0x12   : > { %193 = vxpose.xlu1.b32.start.end [1/1] (short) (narrow) %v192_v1, 8 }
  0x16   : > { %266 = vxpose.xlu1.b32.start.end [1/1] (short) (narrow) %v265_v2, 8 }
  0x91   : > { %v132_v13 = vpop.trf.xlu0 }
  0x92   : > { %v209_v14 = vpop.trf.xlu1  ;;  %v154_v15 = vrot.slane %v132_v13, %v153_v11 }
  0x93   : > { %v231_v16 = vrot.slane %v209_v14, %v153_v11 }
  0x94   : > { %v155_v18 = vcombine.high %v154_v15, %v426_v17  ;;  %v162_v19 = vrot.slane %v154_v15, %v161_v12 }
  0x95   : > { %v232_v20 = vcombine.high %v231_v16, %v426_v17  ;;  %v239_v21 = vrot.slane %v231_v16, %v161_v12 }
  0x96   : > { %v282_v22 = vpop.trf.xlu1  ;;  %v170_v23 = vcombine.high %v162_v19, %v426_v17  ;;  %v169_v24 = vrot.slane %v155_v18, %v161_v12 }
  0x97   : > { %v304_v25 = vrot.slane %v282_v22, %v153_v11  ;;  %v246_v27 = vrot.slane %v232_v20, %v161_v12  ;;  %v247_v28 = vcombine.high %v239_v21, %v426_v17 }
  0x98   : > { %173 = vrot.lane.b32.xlu0 %v170_v23, %s427_s12  ;;  %177 = vrot.lane.b32.xlu1 %v169_v24, %s428_s13  ;;  %v171_v31 = vcombine.high %v169_v24, %v426_v17 }
  0x99   : > { %v312_v26 = vrot.slane %v304_v25, %v161_v12  ;;  %v305_v29 = vcombine.high %v304_v25, %v426_v17  ;;  %v248_v34 = vcombine.high %v246_v27, %v426_v17 }
  0x9b   : > { %v320_v30 = vcombine.high %v312_v26, %v426_v17  ;;  %v319_v32 = vrot.slane %v305_v29, %v161_v12 }
  0x9c   : > { %254 = vrot.lane.b32.xlu0 %v246_v27, %s428_s13  ;;  %250 = vrot.lane.b32.xlu1 %v247_v28, %s427_s12 }
  0x9d   : > { %v321_v33 = vcombine.high %v319_v32, %v426_v17 }
  0xa0   : > { %323 = vrot.lane.b32.xlu1 %v320_v30, %s427_s12  ;;  %181 = vrot.lane.b32.xlu0 %v171_v31, %s429_s14 }
  0xa4   : > { %327 = vrot.lane.b32.xlu1 %v319_v32, %s428_s13  ;;  %331 = vrot.lane.b32.xlu0 %v321_v33, %s429_s14 }
  0xa8   : > { %258 = vrot.lane.b32.xlu1 %v248_v34, %s429_s14 }
 0x10a   : > { %v174_v35 = vpop.permute.xlu0 %173  ;;  %v178_v36 = vpop.permute.xlu1 %177 }
 0x10b   : > { %v185_v39 = vsel %vm184_vm0, %v162_v19, %v174_v35 }
 0x10c   : > { %v187_v40 = vsel %vm186_vm1, %v185_v39, %v178_v36 }
 0x10e   : > { %v255_v37 = vpop.permute.xlu0 %254  ;;  %v251_v38 = vpop.permute.xlu1 %250 }
 0x10f   : > { %v261_v47 = vsel %vm184_vm0, %v239_v21, %v251_v38 }
 0x110   : > { %v262_v50 = vsel %vm186_vm1, %v261_v47, %v255_v37 }
 0x112   : > { %v324_v41 = vpop.permute.xlu1 %323  ;;  %v182_v42 = vpop.permute.xlu0 %181 }
 0x113   : > { %v189_v43 = vsel %vm188_vm2, %v187_v40, %v182_v42  ;;  %v334_v44 = vsel %vm184_vm0, %v312_v26, %v324_v41 }
 0x114   : > { %191 = vst.msk [vmem:[%s114_s18] sm:$0x1] %vm190_vm3, %v189_v43 }
 0x116   : > { %v328_v45 = vpop.permute.xlu1 %327  ;;  %v332_v46 = vpop.permute.xlu0 %331 }
 0x117   : > { %v335_v48 = vsel %vm186_vm1, %v334_v44, %v328_v45 }
 0x118   : > { %v336_v49 = vsel %vm188_vm2, %v335_v48, %v332_v46 }
 0x119   : > { %337 = vst.msk [vmem:[%s114_s18 + $0x2] sm:$0x1] %vm190_vm3, %v336_v49 }
 0x11a   : > { %v259_v51 = vpop.permute.xlu1 %258 }
 0x11b   : > { %v263_v52 = vsel %vm188_vm2, %v262_v50, %v259_v51 }
 0x11c   : > { %264 = vst.msk [vmem:[%s114_s18 + $0x1] sm:$0x1] %vm190_vm3, %v263_v52 }
 0x11d PF: > { %s11_s6 = sadd.s32 1, %s422_s6  }
 0x11e   : > { %p8_p4 = scmp.ge.s32.totalorder %s11_s6, 4  }
 0x120   :  { %10 = sbr.rel (!%p8_p4) target bundleno = 1 (0x1), region = 54 }

</bundles_post_ra>
